<compile_context>
chip_gen: v5e
topology: v5e:2x2
jax: 0.10.0
libtpu: 0.0.40
codegen_flags: <defaults>
</compile_context>

<pallas_src>
import jax
import jax.numpy as jnp
from jax.experimental import pallas as pl
from jax.experimental.pallas import tpu as pltpu


def _round_up(v, m):
    return ((v + m - 1) // m) * m


# ----------------------------------------------------------------------------
# Pallas kernel: one batch tile (BT elements) of encoder + decoder per step
# ----------------------------------------------------------------------------
def cae_kernel(x_ref, len_ref, wenc_ref, benc_ref, wdec_ref, bdec_ref,
               z_ref, out_ref):
    # x_ref   : (BT, F, T)   batch tile, features on sublanes, time on lanes
    # len_ref : (BT, 1)      int32 sequence lengths
    # wenc_ref: (F, L)       encoder weight
    # benc_ref: (1, L)       encoder bias
    # wdec_ref: (L, F)       decoder weight
    # bdec_ref: (1, F)       decoder bias
    # z_ref   : (BT, L)      latent output
    # out_ref : (BT, F, T)   decoded motion output (native layout)
    bt, f, t = x_ref.shape

    lens = len_ref[...]                                           # (BT, 1) i32
    frame_idx = jax.lax.broadcasted_iota(jnp.int32, (bt, t), 1)   # (BT, T)
    maskb = (frame_idx < lens).astype(jnp.float32)                # (BT, T)

    # guarded inverse length (length-0 rows -> pooled = 0, no NaN)
    inv_len = 1.0 / jnp.maximum(lens.astype(jnp.float32), 1.0)    # (BT, 1)
    mnorm = maskb * inv_len                                       # (BT, T)

    # --- encoder: masked mean pooling over time (lane reduce), then linear ---
    x = x_ref[...]                                                # (BT, F, T)
    pooled = jnp.sum(x * mnorm[:, None, :], axis=-1)              # (BT, F)
    z = jnp.dot(pooled, wenc_ref[...],
                preferred_element_type=jnp.float32) + benc_ref[...]   # (BT, L)
    z_ref[...] = z

    # --- decoder: linear from latent, broadcast over frames, re-mask ---
    frame = jnp.dot(z, wdec_ref[...],
                    preferred_element_type=jnp.float32) + bdec_ref[...]  # (BT, F)
    out_ref[...] = frame[:, :, None] * maskb[:, None, :]          # (BT, F, T)


def cae_encode_decode(x_ft, lengths, wenc, benc, wdec, bdec):
    """x_ft: (bs, F, T) f32 (native layout), lengths: (bs,) int32.

    Returns (z: (bs, L), output: (bs, F, T))."""
    bs, f, t = x_ft.shape
    latent = wenc.shape[1]

    # --- batch-tile sizing ---------------------------------------------------
    bs8 = _round_up(bs, 8)
    # 2 pipelined specs (x, out) x 2 buffers x f32 bytes per batch row:
    bytes_per_row = 4 * f * t * 4
    # ~12 MiB budget keeps double-buffering alive under v5e's 16 MiB scoped
    # default and v7x's 32 MiB scoped / 64 MiB physical VMEM.
    vmem_budget = 12 * 1024 * 1024
    bt = max(8, min(512, bs8, (vmem_budget // bytes_per_row) // 8 * 8))
    if bs8 >= 16:
        # guarantee >=2 grid steps so v7x's two TensorCores both get work
        bt = min(bt, max(8, (bs8 // 2) // 8 * 8))
    bs_pad = _round_up(bs, bt)
    # TODO(synk): for very long sequences a second ("arbitrary") grid axis over
    # T with a pooled accumulator would decouple BT from T; single-axis tiling
    # with a VMEM-derived BT is sufficient at these shapes.

    # zero-pad only the batch dim (padding rows have length 0 -> masked out)
    x_p = jnp.pad(x_ft, ((0, bs_pad - bs), (0, 0), (0, 0)))
    len_p = jnp.pad(lengths.astype(jnp.int32), (0, bs_pad - bs))[:, None]

    grid_spec = pltpu.PrefetchScalarGridSpec(
        num_scalar_prefetch=0,
        grid=(bs_pad // bt,),
        in_specs=[
            pl.BlockSpec((bt, f, t), lambda b: (b, 0, 0)),
            pl.BlockSpec((bt, 1), lambda b: (b, 0)),
            pl.BlockSpec((f, latent), lambda b: (0, 0)),
            pl.BlockSpec((1, latent), lambda b: (0, 0)),
            pl.BlockSpec((latent, f), lambda b: (0, 0)),
            pl.BlockSpec((1, f), lambda b: (0, 0)),
        ],
        out_specs=[
            pl.BlockSpec((bt, latent), lambda b: (b, 0)),
            pl.BlockSpec((bt, f, t), lambda b: (b, 0, 0)),
        ],
    )

    z_p, out_p = pl.pallas_call(
        cae_kernel,
        out_shape=(
            jax.ShapeDtypeStruct((bs_pad, latent), jnp.float32),
            jax.ShapeDtypeStruct((bs_pad, f, t), jnp.float32),
        ),
        grid_spec=grid_spec,
        compiler_params=pltpu.CompilerParams(
            dimension_semantics=("parallel",)),
    )(x_p, len_p, wenc, benc, wdec, bdec)

    return z_p[:bs], out_p[:bs]


# Whole forward hot-path in one jit so the (free) reshapes and the tiny batch
# pad fuse with the pallas_call; no transposes are emitted anywhere.
@jax.jit
def _cae_forward_jit(x, lengths, wenc, benc, wdec, bdec):
    bs, nj, nf, t = x.shape
    feat = nj * nf
    x_ft = x.reshape(bs, feat, t).astype(jnp.float32)   # native (bs, F, T)
    z, out_ft = cae_encode_decode(x_ft, lengths, wenc, benc, wdec, bdec)
    output = out_ft.reshape(bs, nj, nf, t)
    return z, output


# ----------------------------------------------------------------------------
# CAE module wrapper (matches CAE.forward semantics for pose_rep='xyz')
# ----------------------------------------------------------------------------
class CAEPallas:
    def __init__(self, njoints, nfeats, latent_dim, key):
        self.njoints = njoints
        self.nfeats = nfeats
        self.feat = njoints * nfeats
        self.latent_dim = latent_dim
        self.pose_rep = "xyz"
        self.outputxyz = False
        k1, k2, k3, k4 = jax.random.split(key, 4)
        s_enc = 1.0 / jnp.sqrt(jnp.float32(self.feat))
        s_dec = 1.0 / jnp.sqrt(jnp.float32(latent_dim))
        self.wenc = (jax.random.normal(k1, (self.feat, latent_dim), jnp.float32)
                     * s_enc)
        self.benc = jax.random.normal(k2, (1, latent_dim), jnp.float32) * 0.01
        self.wdec = (jax.random.normal(k3, (latent_dim, self.feat), jnp.float32)
                     * s_dec)
        self.bdec = jax.random.normal(k4, (1, self.feat), jnp.float32) * 0.01

    @staticmethod
    def lengths_to_mask(lengths, max_len):
        index = jnp.arange(max_len)[None, :]
        return index < lengths[:, None]

    def forward(self, batch):
        # batch['x']: (bs, njoints, nfeats, nframes)  -- PyTorch convention
        x = batch["x"]

        # if self.outputxyz: rot2xyz(...)  -> not taken for pose_rep='xyz'
        # TODO(synk): Rotation2xyz (SMPL forward kinematics) has no clean
        # Pallas equivalent; this instance uses pose_rep='xyz', outputxyz=False.
        if self.pose_rep == "xyz":
            batch["x_xyz"] = batch["x"]

        if "lengths" in batch:
            lengths = batch["lengths"].astype(jnp.int32)
        else:
            lengths = jnp.sum(batch["mask"].astype(jnp.int32), axis=-1)

        z, output = _cae_forward_jit(
            x, lengths, self.wenc, self.benc, self.wdec, self.bdec)

        batch["z"] = z
        batch["output"] = output
        if self.pose_rep == "xyz":
            batch["output_xyz"] = batch["output"]
        return batch


# ----------------------------------------------------------------------------
# Pure-JAX reference (same math, no Pallas) for validation
# ----------------------------------------------------------------------------
def reference(x_ft, lengths, wenc, benc, wdec, bdec):
    bs, f, t = x_ft.shape
    mask = (jnp.arange(t)[None, :] < lengths[:, None]).astype(jnp.float32)
    inv = 1.0 / jnp.maximum(lengths.astype(jnp.float32), 1.0)
    mnorm = mask * inv[:, None]                                   # (bs, T)
    pooled = jnp.sum(x_ft * mnorm[:, None, :], axis=-1)           # (bs, F)
    z = pooled @ wenc + benc                                      # (bs, L)
    frame = z @ wdec + bdec                                       # (bs, F)
    out = frame[:, :, None] * mask[:, None, :]                    # (bs, F, T)
    return z, out


if __name__ == "__main__":
    bs, njoints, nfeats, nframes = 3, 8, 4, 8
    latent_dim = 32

    key = jax.random.PRNGKey(0)
    kx, kparams = jax.random.split(key)

    model = CAEPallas(njoints, nfeats, latent_dim, kparams)

    x = jax.random.normal(kx, (bs, njoints, nfeats, nframes), jnp.float32)
    lengths = jnp.array([nframes, nframes - 3, 0], dtype=jnp.int32)
    mask = CAEPallas.lengths_to_mask(lengths, nframes)

    batch = {"x": x, "mask": mask, "lengths": lengths}
    batch = model.forward(batch)

    z = jax.block_until_ready(batch["z"])
    output = jax.block_until_ready(batch["output"])
    output_xyz = jax.block_until_ready(batch["output_xyz"])

    # validate against pure-JAX reference (native (bs, F, T) layout)
    x_ft = x.reshape(bs, njoints * nfeats, nframes)
    z_ref, out_ref = reference(x_ft, lengths, model.wenc, model.benc,
                               model.wdec, model.bdec)
    out_ref_pt = out_ref.reshape(bs, njoints, nfeats, nframes)

    assert z.shape == (bs, latent_dim)
    assert output.shape == (bs, njoints, nfeats, nframes)
    assert not bool(jnp.any(jnp.isnan(z))), "NaN in latent"
    assert not bool(jnp.any(jnp.isnan(output))), "NaN in output"
    assert jnp.allclose(z, z_ref, atol=1e-5, rtol=1e-5)
    assert jnp.allclose(output, out_ref_pt, atol=1e-5, rtol=1e-5)
    assert jnp.allclose(output_xyz, output)
    assert jnp.allclose(batch["x_xyz"], x)

    print("KERNEL_OK")
</pallas_src>

<mosaic_0001>
module attributes {stable_mosaic.version = 11 : i64} {
  func.func @cae_kernel(%arg0: i32, %arg1: memref<8x32x8xf32, #tpu.memory_space<vmem>>, %arg2: memref<8x1xi32, #tpu.memory_space<vmem>>, %arg3: memref<32x32xf32, #tpu.memory_space<vmem>>, %arg4: memref<1x32xf32, #tpu.memory_space<vmem>>, %arg5: memref<32x32xf32, #tpu.memory_space<vmem>>, %arg6: memref<1x32xf32, #tpu.memory_space<vmem>>, %arg7: memref<8x32xf32, #tpu.memory_space<vmem>>, %arg8: memref<8x32x8xf32, #tpu.memory_space<vmem>>) attributes {dimension_semantics = [#tpu.dimension_semantics<parallel>], iteration_bounds = array<i64: 1>, scalar_prefetch = 0 : i64, scratch_operands = 0 : i64, tpu.core_type = #tpu.core_type<tc>, window_params = [{transform_indices = @transform_0, window_bounds = array<i64: 8, 32, 8>}, {transform_indices = @transform_1, window_bounds = array<i64: 8, 1>}, {pipeline_mode = #tpu.pipeline_mode<synchronous>, transform_indices = @transform_2, window_bounds = array<i64: 32, 32>}, {pipeline_mode = #tpu.pipeline_mode<synchronous>, transform_indices = @transform_3, window_bounds = array<i64: 1, 32>}, {pipeline_mode = #tpu.pipeline_mode<synchronous>, transform_indices = @transform_4, window_bounds = array<i64: 32, 32>}, {pipeline_mode = #tpu.pipeline_mode<synchronous>, transform_indices = @transform_5, window_bounds = array<i64: 1, 32>}, {transform_indices = @transform_6, window_bounds = array<i64: 8, 32>}, {transform_indices = @transform_7, window_bounds = array<i64: 8, 32, 8>}]} {
    %c0 = arith.constant 0 : index
    %c0_0 = arith.constant 0 : index
    %0 = vector.load %arg2[%c0, %c0_0] : memref<8x1xi32, #tpu.memory_space<vmem>>, vector<8x1xi32>
    %1 = tpu.iota {dimensions = array<i32: 1>} : vector<8x8xi32>
    %2 = vector.broadcast %0 : vector<8x1xi32> to vector<8x8xi32>
    %3 = arith.cmpi slt, %1, %2 : vector<8x8xi32>
    %4 = arith.extui %3 : vector<8x8xi1> to vector<8x8xi32>
    %5 = arith.sitofp %4 : vector<8x8xi32> to vector<8x8xf32>
    %6 = arith.sitofp %0 : vector<8x1xi32> to vector<8x1xf32>
    %cst = arith.constant 1.000000e+00 : f32
    %7 = vector.broadcast %cst : f32 to vector<8x1xf32>
    %8 = arith.maximumf %6, %7 : vector<8x1xf32>
    %cst_1 = arith.constant 1.000000e+00 : f32
    %9 = vector.broadcast %cst_1 : f32 to vector<8x1xf32>
    %10 = arith.divf %9, %8 : vector<8x1xf32>
    %11 = vector.broadcast %10 : vector<8x1xf32> to vector<8x8xf32>
    %12 = arith.mulf %5, %11 : vector<8x8xf32>
    %c0_2 = arith.constant 0 : index
    %c0_3 = arith.constant 0 : index
    %c0_4 = arith.constant 0 : index
    %13 = vector.load %arg1[%c0_2, %c0_3, %c0_4] : memref<8x32x8xf32, #tpu.memory_space<vmem>>, vector<8x32x8xf32>
    %14 = vector.shape_cast %12 : vector<8x8xf32> to vector<8x1x8xf32>
    %15 = vector.broadcast %14 : vector<8x1x8xf32> to vector<8x32x8xf32>
    %16 = arith.mulf %13, %15 : vector<8x32x8xf32>
    %cst_5 = arith.constant dense<0.000000e+00> : vector<8x32xf32>
    %17 = vector.multi_reduction <add>, %16, %cst_5 [2] : vector<8x32x8xf32> to vector<8x32xf32>
    %c0_6 = arith.constant 0 : index
    %c0_7 = arith.constant 0 : index
    %18 = vector.load %arg3[%c0_6, %c0_7] : memref<32x32xf32, #tpu.memory_space<vmem>>, vector<32x32xf32>
    %cst_8 = arith.constant dense<0.000000e+00> : vector<8x32xf32>
    %19 = tpu.matmul %17, %18, %cst_8 {dimension_numbers = #tpu.dot_dimension_numbers<[1], [0], [0], [1], [0, 0, 1, 1], [], []>} : vector<8x32xf32>, vector<32x32xf32>, vector<8x32xf32> -> vector<8x32xf32>
    %c0_9 = arith.constant 0 : index
    %c0_10 = arith.constant 0 : index
    %20 = vector.load %arg4[%c0_9, %c0_10] : memref<1x32xf32, #tpu.memory_space<vmem>>, vector<1x32xf32>
    %21 = vector.broadcast %20 : vector<1x32xf32> to vector<8x32xf32>
    %22 = arith.addf %19, %21 : vector<8x32xf32>
    %c0_11 = arith.constant 0 : index
    %c0_12 = arith.constant 0 : index
    %23 = vector.load %arg7[%c0_11, %c0_12] : memref<8x32xf32, #tpu.memory_space<vmem>>, vector<8x32xf32>
    tpu.vector_store %arg7[%c0_11, %c0_12], %22 {strides = array<i32>} : memref<8x32xf32, #tpu.memory_space<vmem>>, vector<8x32xf32>,
    %c0_13 = arith.constant 0 : index
    %c0_14 = arith.constant 0 : index
    %24 = vector.load %arg5[%c0_13, %c0_14] : memref<32x32xf32, #tpu.memory_space<vmem>>, vector<32x32xf32>
    %cst_15 = arith.constant dense<0.000000e+00> : vector<8x32xf32>
    %25 = tpu.matmul %22, %24, %cst_15 {dimension_numbers = #tpu.dot_dimension_numbers<[1], [0], [0], [1], [0, 0, 1, 1], [], []>} : vector<8x32xf32>, vector<32x32xf32>, vector<8x32xf32> -> vector<8x32xf32>
    %c0_16 = arith.constant 0 : index
    %c0_17 = arith.constant 0 : index
    %26 = vector.load %arg6[%c0_16, %c0_17] : memref<1x32xf32, #tpu.memory_space<vmem>>, vector<1x32xf32>
    %27 = vector.broadcast %26 : vector<1x32xf32> to vector<8x32xf32>
    %28 = arith.addf %25, %27 : vector<8x32xf32>
    %29 = vector.shape_cast %28 : vector<8x32xf32> to vector<8x32x1xf32>
    %30 = vector.shape_cast %5 : vector<8x8xf32> to vector<8x1x8xf32>
    %31 = vector.broadcast %29 : vector<8x32x1xf32> to vector<8x32x8xf32>
    %32 = vector.broadcast %30 : vector<8x1x8xf32> to vector<8x32x8xf32>
    %33 = arith.mulf %31, %32 : vector<8x32x8xf32>
    %c0_18 = arith.constant 0 : index
    %c0_19 = arith.constant 0 : index
    %c0_20 = arith.constant 0 : index
    %34 = vector.load %arg8[%c0_18, %c0_19, %c0_20] : memref<8x32x8xf32, #tpu.memory_space<vmem>>, vector<8x32x8xf32>
    tpu.vector_store %arg8[%c0_18, %c0_19, %c0_20], %33 {strides = array<i32>} : memref<8x32x8xf32, #tpu.memory_space<vmem>>, vector<8x32x8xf32>,
    return
  }
  func.func @transform_0(%arg0: i32) -> (i32, i32, i32) {
    %c0_i32 = arith.constant 0 : i32
    %c0_i32_0 = arith.constant 0 : i32
    %c0_i32_1 = arith.constant 0 : i32
    return %arg0, %c0_i32, %c0_i32_0 : i32, i32, i32
  }
  func.func @transform_1(%arg0: i32) -> (i32, i32) {
    %c0_i32 = arith.constant 0 : i32
    %c0_i32_0 = arith.constant 0 : i32
    return %arg0, %c0_i32 : i32, i32
  }
  func.func @transform_2(%arg0: i32) -> (i32, i32) {
    %c0_i32 = arith.constant 0 : i32
    %c0_i32_0 = arith.constant 0 : i32
    %c0_i32_1 = arith.constant 0 : i32
    return %c0_i32, %c0_i32_0 : i32, i32
  }
  func.func @transform_3(%arg0: i32) -> (i32, i32) {
    %c0_i32 = arith.constant 0 : i32
    %c0_i32_0 = arith.constant 0 : i32
    %c0_i32_1 = arith.constant 0 : i32
    return %c0_i32, %c0_i32_0 : i32, i32
  }
  func.func @transform_4(%arg0: i32) -> (i32, i32) {
    %c0_i32 = arith.constant 0 : i32
    %c0_i32_0 = arith.constant 0 : i32
    %c0_i32_1 = arith.constant 0 : i32
    return %c0_i32, %c0_i32_0 : i32, i32
  }
  func.func @transform_5(%arg0: i32) -> (i32, i32) {
    %c0_i32 = arith.constant 0 : i32
    %c0_i32_0 = arith.constant 0 : i32
    %c0_i32_1 = arith.constant 0 : i32
    return %c0_i32, %c0_i32_0 : i32, i32
  }
  func.func @transform_6(%arg0: i32) -> (i32, i32) {
    %c0_i32 = arith.constant 0 : i32
    %c0_i32_0 = arith.constant 0 : i32
    return %arg0, %c0_i32 : i32, i32
  }
  func.func @transform_7(%arg0: i32) -> (i32, i32, i32) {
    %c0_i32 = arith.constant 0 : i32
    %c0_i32_0 = arith.constant 0 : i32
    %c0_i32_1 = arith.constant 0 : i32
    return %arg0, %c0_i32, %c0_i32_0 : i32, i32, i32
  }
}

</mosaic_0001>

<bundles_post_ra>
// kernel: _cae_forward_jit.1
= control target key start
LH: loop header
LB: loop body
LE: loop exit
PB: predicated region body
PF: predicated region fallthrough
CT: control target
= control target key end

     0   :  { %v751_v0 = vmov 0   ;;  %v26_v14 = vlaneseq  ;;  %v752_v17 = vmov 0.0   ;;  %vm145_vm5 = vcmask 64512   ;;  %s1277_s1 = inlined_call_operand.vmem [shape: s32[8,1], index: 1, kind: input, shape index: {}]   ;;  %s1278_s0 = inlined_call_operand.vmem [shape: f32[8,32,8], index: 0, kind: input, shape index: {}]   ;;  %s1279_s3 = inlined_call_operand.vmem [shape: f32[1,32], index: 3, kind: input, shape index: {}]   ;;  %s1280_s2 = inlined_call_operand.vmem [shape: f32[32,32], index: 2, kind: input, shape index: {}]   ;;  %s1281_s4 = inlined_call_operand.vmem [shape: f32[32,32], index: 4, kind: input, shape index: {}]   ;;  %s1282_s5 = inlined_call_operand.vmem [shape: f32[1,32], index: 5, kind: input, shape index: {}]   ;;  %s1283_s6 = inlined_call_operand.vmem [shape: f32[8,32], index: 6, kind: output, shape index: {0}]   ;;  %s1284_s7 = inlined_call_operand.vmem [shape: f32[8,32,8], index: 7, kind: output, shape index: {1}]  }
   0x1   :  { %714 = vset.pattern.permute.xlu0 %v751_v0  ;;  %v25_v1 = vld [vmem:[%s1277_s1] sm:$0xff]  ;;  %v60_v21 = vld [vmem:[%s1278_s0 + $0x18] sm:$0xff]  ;;  %v59_v22 = vld [vmem:[%s1278_s0 + $0x10] sm:$0xff]  ;;  %vm285_vm6 = vcmask 130112   ;;  %vm289_vm7 = vcmask 195712   ;;  %vm293_vm8 = vcmask 261312  }
   0x2   :  { %29 = vperm.xlu0 %714, %v25_v1   ;;  %v34_v2 = vcvt.s32.f32 %v25_v1  ;;  %v797_v16 = vand.u32 127, %v26_v14  ;;  %v57_v23 = vld [vmem:[%s1278_s0] sm:$0xff]  ;;  %v72_v36 = vld [vmem:[%s1278_s0 + $0x78] sm:$0xff]  ;;  %v58_v38 = vld [vmem:[%s1278_s0 + $0x8] sm:$0xff]  ;;  %vm344_vm9 = vcmask 1041409   ;;  %vm346_vm10 = vcmask 1042434  }
   0x3   :  { %v61_v35 = vld [vmem:[%s1278_s0 + $0x20] sm:$0xff]  ;;  %v80_v43 = vld [vmem:[%s1278_s0 + $0xb8] sm:$0xff]  ;;  %v62_v47 = vld [vmem:[%s1278_s0 + $0x28] sm:$0xff]  ;;  %vm348_vm11 = vcmask 1043459   ;;  %vm350_vm12 = vcmask 1044484   ;;  %vm352_vm13 = vcmask 1045509  }
   0x4   :  { %v35_v3 = vmax.f32 %v34_v2, 1.0  ;;  %v78_v48 = vld [vmem:[%s1278_s0 + $0xa8] sm:$0xff]  ;;  %v63_v51 = vld [vmem:[%s1278_s0 + $0x30] sm:$0xff]  ;;  %v85_v57 = vld [vmem:[%s1278_s0 + $0xe0] sm:$0xff]  ;;  %vm354_vm14 = vcmask 1046534   ;;  %vm356_vm15 = vcmask 1047559  }
   0x5   :  { %v86_v52 = vld [vmem:[%s1278_s0 + $0xe8] sm:$0xff]  ;;  %v88_v58 = vld [vmem:[%s1278_s0 + $0xf8] sm:$0xff]  ;;  %v87_v59 = vld [vmem:[%s1278_s0 + $0xf0] sm:$0xff] }
   0x6   :  { %749 = vrcp.f32 %v35_v3  ;;  %v47_v6 = vand.u32 2147483648, %v35_v3  ;;  %vm41_vm0 = vweird.f32 %v35_v3  ;;  %v45_v8 = vand.u32 2147483647, %v35_v3 }
   0x8   :  { %v48_v10 = vor.u32 1.1754944e-38, %v47_v6  ;;  %vm46_vm3 = vcmp.eq.f32.partialorder %v45_v8, 8.507059e+37  ;;  %v81_v8 = vld [vmem:[%s1278_s0 + $0xc0] sm:$0xff] }
   0xc   :  { %v750_v4 = vpop.eup %749 }
   0xd   :  { %v37_v5 = vmul.f32 %v750_v4, %v35_v3  ;;  %vm42_vm1 = vweird.f32 %v750_v4 }
   0xe   :  { %vm43_vm2 = vmor %vm41_vm0, %vm42_vm1  ;;  %vm358_vm0 = vcmask 261120  }
   0xf   :  { %v38_v7 = vsub.f32 1.0, %v37_v5 }
  0x11   :  { %v39_v9 = vmul.f32 %v750_v4, %v38_v7  ;;  %v65_v7 = vld [vmem:[%s1278_s0 + $0x40] sm:$0xff] }
  0x13   :  { %v40_v11 = vadd.f32 %v750_v4, %v39_v9  ;;  %v66_v9 = vld [vmem:[%s1278_s0 + $0x48] sm:$0xff] }
  0x15   :  { %v44_v12 = vsel %vm43_vm2, %v750_v4, %v40_v11 }
  0x16   :  { %v49_v13 = vsel %vm46_vm3, %v48_v10, %v44_v12 }
  0x17   :  { %53 = vperm.xlu0 %714, %v49_v13  }
  0x74   :  { %v30_v15 = vpop.permute.xlu0 %29 }
  0x75   :  { %vm31_vm4 = vcmp.lt.s32.totalorder %v797_v16, %v30_v15 }
  0x76   :  { %v800_v18 = vsel %vm31_vm4, 1.0, %v752_v17 }
  0x89   :  { %v54_v19 = vpop.permute.xlu0 %53 }
  0x8a   :  { %v803_v20 = vmul.f32 %v800_v18, %v54_v19  ;;  %v67_v19 = vld [vmem:[%s1278_s0 + $0x50] sm:$0xff] }
  0x8c   :  { %v97_v24 = vperm.slane %v803_v20, 0  ;;  %v90_v25 = vrot.slane %v803_v20, 1  ;;  %v92_v26 = vrot.slane %v803_v20, 3  ;;  %v94_v37 = vrot.slane %v803_v20, 5 }
  0x8d   :  { %v96_v50 = vrot.slane %v803_v20, 7  ;;  %v91_v55 = vrot.slane %v803_v20, 2  ;;  %v95_v56 = vrot.slane %v803_v20, 6 }
  0x8e   :  { %v116_v27 = vmul.f32 %v97_v24, %v60_v21  ;;  %v115_v28 = vmul.f32 %v97_v24, %v59_v22  ;;  %v113_v29 = vmul.f32 %v97_v24, %v57_v23  ;;  %v817_v30 = vperm.slane %v90_v25, 0  ;;  %v83_v21 = vld [vmem:[%s1278_s0 + $0xd0] sm:$0xff]  ;;  %v64_v22 = vld [vmem:[%s1278_s0 + $0x38] sm:$0xff] }
  0x8f   :  { %v822_v34 = vperm.slane %v92_v26, 0  ;;  %v114_v41 = vmul.f32 %v97_v24, %v58_v38  ;;  %v836_v42 = vperm.slane %v94_v37, 0  ;;  %v104_v61 = vperm.slane %v96_v50, 0  ;;  %v73_v50 = vld [vmem:[%s1278_s0 + $0x80] sm:$0xff] }
  0x90   :  { %v155_v31 = vsel %vm145_vm5, %v116_v27, 0.0  ;;  %v152_v32 = vsel %vm145_vm5, %v115_v28, 0.0  ;;  %v146_v33 = vsel %vm145_vm5, %v113_v29, 0.0  ;;  %v117_v39 = vmul.f32 %v817_v30, %v61_v35  ;;  %v70_v29 = vld [vmem:[%s1278_s0 + $0x68] sm:$0xff] }
  0x91   :  { %156 = vadd.xlane.f32.xlu2 %v155_v31  ;;  %153 = vadd.xlane.f32.xlu0 %v152_v32  ;;  %v128_v40 = vmul.f32 %v822_v34, %v72_v36  ;;  %v149_v46 = vsel %vm145_vm5, %v114_v41, 0.0  ;;  %v851_v49 = vmul.f32 %v836_v42, %v80_v43  ;;  %v118_v53 = vmul.f32 %v817_v30, %v62_v47  ;;  %v84_v31 = vld [vmem:[%s1278_s0 + $0xd8] sm:$0xff] }
  0x92   :  { %147 = vadd.xlane.f32.xlu1 %v146_v33  ;;  %v158_v44 = vsel %vm145_vm5, %v117_v39, 0.0  ;;  %v134_v54 = vmul.f32 %v836_v42, %v78_v48  ;;  %v119_v60 = vmul.f32 %v817_v30, %v63_v51  ;;  %v874_v62 = vmul.f32 %v104_v61, %v86_v52  ;;  %v71_v39 = vld [vmem:[%s1278_s0 + $0x70] sm:$0xff]  ;;  %v74_v48 = vld [vmem:[%s1278_s0 + $0x88] sm:$0xff] }
  0x93   :  { %v191_v45 = vsel %vm145_vm5, %v128_v40, 0.0  ;;  %v876_v63 = vmul.f32 %v104_v61, %v85_v57  ;;  %v878_v0 = vmul.f32 %v104_v61, %v88_v58  ;;  %v880_v1 = vmul.f32 %v104_v61, %v87_v59  ;;  %v68_v40 = vld [vmem:[%s1278_s0 + $0x58] sm:$0xff]  ;;  %v79_v59 = vld [vmem:[%s1278_s0 + $0xb0] sm:$0xff] }
  0x94   :  { %v161_v2 = vsel %vm145_vm5, %v118_v53, 0.0  ;;  %v209_v3 = vsel %vm145_vm5, %v134_v54, 0.0  ;;  %v99_v4 = vperm.slane %v91_v55, 0  ;;  %v884_v5 = vperm.slane %v95_v56, 0  ;;  %v77_v53 = vld [vmem:[%s1278_s0 + $0xa0] sm:$0xff]  ;;  %v75_v54 = vld [vmem:[%s1278_s0 + $0x90] sm:$0xff] }
  0x95   :  { %v164_v6 = vsel %vm145_vm5, %v119_v60, 0.0  ;;  %v120_v25 = vmul.f32 %v817_v30, %v64_v22  ;;  %v69_v30 = vld [vmem:[%s1278_s0 + $0x60] sm:$0xff]  ;;  %v126_v32 = vmul.f32 %v822_v34, %v70_v29  ;;  %v127_v41 = vmul.f32 %v822_v34, %v71_v39  ;;  %v76_v60 = vld [vmem:[%s1278_s0 + $0x98] sm:$0xff] }
  0x96   :  { %v121_v10 = vmul.f32 %v99_v4, %v65_v7  ;;  %v137_v11 = vmul.f32 %v884_v5, %v81_v8  ;;  %v122_v12 = vmul.f32 %v99_v4, %v66_v9  ;;  %v123_v23 = vmul.f32 %v99_v4, %v67_v19 }
  0x97   :  { %v139_v24 = vmul.f32 %v884_v5, %v83_v21  ;;  %v167_v28 = vsel %vm145_vm5, %v120_v25, 0.0  ;;  %v140_v33 = vmul.f32 %v884_v5, %v84_v31  ;;  %v125_v35 = vmul.f32 %v822_v34, %v69_v30 }
  0x98   :  { %v170_v13 = vsel %vm145_vm5, %v121_v10, 0.0  ;;  %v218_v15 = vsel %vm145_vm5, %v137_v11, 0.0  ;;  %v173_v17 = vsel %vm145_vm5, %v122_v12, 0.0  ;;  %v176_v26 = vsel %vm145_vm5, %v123_v23, 0.0 }
  0x99   :  { %159 = vadd.xlane.f32.xlu2 %v158_v44  ;;  %192 = vadd.xlane.f32.xlu0 %v191_v45  ;;  %v224_v27 = vsel %vm145_vm5, %v139_v24, 0.0  ;;  %v185_v36 = vsel %vm145_vm5, %v126_v32, 0.0  ;;  %v227_v37 = vsel %vm145_vm5, %v140_v33, 0.0  ;;  %v182_v38 = vsel %vm145_vm5, %v125_v35, 0.0 }
  0x9a   :  { %150 = vadd.xlane.f32.xlu1 %v149_v46  ;;  %v93_v43 = vrot.slane %v803_v20, 4  ;;  %v124_v44 = vmul.f32 %v99_v4, %v68_v40  ;;  %v188_v45 = vsel %vm145_vm5, %v127_v41, 0.0  ;;  %v133_v55 = vmul.f32 %v836_v42, %v77_v53 }
  0x9b   :  { %v135_v61 = vmul.f32 %v836_v42, %v79_v59  ;;  %v215_v8 = vsel %vm145_vm5, %v851_v49, 0.0  ;;  %v233_v42 = vsel %vm145_vm5, %v874_v62, 0.0  ;;  %v230_v10 = vsel %vm145_vm5, %v876_v63, 0.0 }
  0x9c   :  { %v101_v46 = vperm.slane %v93_v43, 0  ;;  %v179_v47 = vsel %vm145_vm5, %v124_v44, 0.0  ;;  %v206_v57 = vsel %vm145_vm5, %v133_v55, 0.0  ;;  %v239_v11 = vsel %vm145_vm5, %v878_v0, 0.0 }
  0x9d   :  { %v984_v62 = vadd.s32 4294967280, %v797_v16 }
  0x9e   :  { %v130_v51 = vmul.f32 %v101_v46, %v74_v48  ;;  %v129_v34 = vmul.f32 %v101_v46, %v73_v50  ;;  %v131_v56 = vmul.f32 %v101_v46, %v75_v54 }
  0xa0   :  { %v197_v20 = vsel %vm145_vm5, %v130_v51, 0.0  ;;  %v194_v52 = vsel %vm145_vm5, %v129_v34, 0.0  ;;  %v200_v58 = vsel %vm145_vm5, %v131_v56, 0.0  ;;  %v245_v56 = vld [vmem:[%s1280_s2 + $0x18] sm:$0xff] }
  0xa1   :  { %162 = vadd.xlane.f32.xlu2 %v161_v2  ;;  %210 = vadd.xlane.f32.xlu0 %v209_v3  ;;  %v132_v2 = vmul.f32 %v101_v46, %v76_v60  ;;  %v212_v3 = vsel %vm145_vm5, %v135_v61, 0.0  ;;  %v244_v60 = vld [vmem:[%s1280_s2 + $0x10] sm:$0xff]  ;;  %v243_v61 = vld [vmem:[%s1280_s2 + $0x8] sm:$0xff] }
  0xa2   :  { %165 = vadd.xlane.f32.xlu1 %v164_v6  ;;  %v82_v6 = vld [vmem:[%s1278_s0 + $0xc8] sm:$0xff]  ;;  %373 = vmatpush.msra.mxu0 %v245_v56  ;;  %v1071_v56 = vshrl.u32 %v26_v14, 7 }
  0xa3   :  { %v203_v4 = vsel %vm145_vm5, %v132_v2, 0.0  ;;  %v138_v7 = vmul.f32 %v884_v5, %v82_v6  ;;  %v236_v5 = vsel %vm145_vm5, %v880_v1, 0.0  ;;  %v242_v2 = vld [vmem:[%s1280_s2] sm:$0xff] }
  0xa4   :  { %374 = vmatpush.msra.mxu0 %v244_v60  ;;  %715 = vset.pattern.permute.xlu0 %v1071_v56 }
  0xa5   :  { %v221_v9 = vsel %vm145_vm5, %v138_v7, 0.0 }
  0xa6   :  { %375 = vmatpush.msra.mxu0 %v243_v61  ;;  %v748_v61 = vld [vmem:[%s1282_s5] ss:$0 sm:$0xff] }
  0xa8   :  { %376 = vmatpush.msra.mxu0 %v242_v2 }
  0xa9   :  { %171 = vadd.xlane.f32.xlu2 %v170_v13  ;;  %219 = vadd.xlane.f32.xlu0 %v218_v15  ;;  %v981_v13 = vadd.s32 4294967288, %v797_v16  ;;  %v987_v15 = vadd.s32 4294967272, %v797_v16 }
  0xaa   :  { %174 = vadd.xlane.f32.xlu1 %v173_v17 }
  0xb1   :  { %177 = vadd.xlane.f32.xlu2 %v176_v26  ;;  %225 = vadd.xlane.f32.xlu0 %v224_v27 }
  0xb2   :  { %168 = vadd.xlane.f32.xlu1 %v167_v28 }
  0xb9   :  { %186 = vadd.xlane.f32.xlu2 %v185_v36  ;;  %228 = vadd.xlane.f32.xlu0 %v227_v37 }
  0xba   :  { %183 = vadd.xlane.f32.xlu1 %v182_v38 }
  0xc1   :  { %189 = vadd.xlane.f32.xlu2 %v188_v45 }
  0xc2   :  { %180 = vadd.xlane.f32.xlu1 %v179_v47 }
  0xc9   :  { %198 = vadd.xlane.f32.xlu2 %v197_v20 }
  0xca   :  { %195 = vadd.xlane.f32.xlu1 %v194_v52 }
  0xd1   :  { %207 = vadd.xlane.f32.xlu2 %v206_v57 }
  0xd2   :  { %201 = vadd.xlane.f32.xlu1 %v200_v58 }
  0xd9   :  { %213 = vadd.xlane.f32.xlu2 %v212_v3  ;;  %v385_v3 = vld [vmem:[%s1281_s4 + $0x18] sm:$0xff] }
  0xda   :  { %204 = vadd.xlane.f32.xlu1 %v203_v4  ;;  %v384_v4 = vld [vmem:[%s1281_s4 + $0x10] sm:$0xff]  ;;  %405 = vmatpush.msra.mxu1 %v385_v3 }
  0xdc   :  { %406 = vmatpush.msra.mxu1 %v384_v4 }
  0xe1   :  { %216 = vadd.xlane.f32.xlu2 %v215_v8 }
  0xe2   :  { %222 = vadd.xlane.f32.xlu1 %v221_v9 }
  0xe9   :  { %234 = vadd.xlane.f32.xlu2 %v233_v42 }
  0xea   :  { %231 = vadd.xlane.f32.xlu1 %v230_v10 }
  0xf1   :  { %240 = vadd.xlane.f32.xlu2 %v239_v11 }
  0xf2   :  { %237 = vadd.xlane.f32.xlu1 %v236_v5 }
 0x104   :  { %v157_v49 = vpop.xlane.xlu2 %156  ;;  %v154_v63 = vpop.xlane.xlu0 %153 }
 0x105   :  { %v148_v12 = vpop.xlane.xlu1 %147  ;;  %v288_v21 = vperm.slane %v154_v63, %v984_v62  ;;  %v292_v22 = vperm.slane %v157_v49, %v987_v15 }
 0x106   :  { %v282_v19 = vperm.slane %v148_v12, %v797_v16 }
 0x10c   :  { %v160_v17 = vpop.xlane.xlu2 %159  ;;  %v193_v52 = vpop.xlane.xlu0 %192 }
 0x10d   :  { %v151_v0 = vpop.xlane.xlu1 %150  ;;  %v295_v27 = vperm.slane %v160_v17, %v797_v16 }
 0x10e   :  { %v284_v1 = vperm.slane %v151_v0, %v981_v13 }
 0x110   :  { %v286_v23 = vsel %vm285_vm6, %v284_v1, %v282_v19 }
 0x111   :  { %v290_v24 = vsel %vm289_vm7, %v288_v21, %v286_v23 }
 0x112   :  { %v294_v25 = vsel %vm293_vm8, %v292_v22, %v290_v24 }
 0x114   :  { %v163_v26 = vpop.xlane.xlu2 %162  ;;  %v211_v57 = vpop.xlane.xlu0 %210 }
 0x115   :  { %v296_v28 = vperm.slane %v163_v26, %v981_v13  ;;  %v166_v29 = vpop.xlane.xlu1 %165 }
 0x116   :  { %v298_v31 = vperm.slane %v166_v29, %v984_v62 }
 0x117   :  { %v297_v30 = vsel %vm285_vm6, %v296_v28, %v295_v27  ;;  %v314_v27 = vperm.slane %v193_v52, %v987_v15  ;;  %v324_v28 = vperm.slane %v211_v57, %v981_v13  ;;  %v1074_v57 = vadd.s32 16, %v1071_v56 }
 0x118   :  { %v299_v32 = vsel %vm289_vm7, %v298_v31, %v297_v30 }
 0x119   :  { %717 = vset.pattern.permute.xlu2 %v1074_v57 }
 0x11c   :  { %v172_v33 = vpop.xlane.xlu2 %171  ;;  %v220_v7 = vpop.xlane.xlu0 %219 }
 0x11d   :  { %v302_v35 = vperm.slane %v172_v33, %v797_v16  ;;  %v175_v36 = vpop.xlane.xlu1 %174  ;;  %v330_v23 = vperm.slane %v220_v7, %v797_v16 }
 0x11e   :  { %v303_v37 = vperm.slane %v175_v36, %v981_v13 }
 0x120   :  { %v304_v38 = vsel %vm285_vm6, %v303_v37, %v302_v35 }
 0x124   :  { %v178_v39 = vpop.xlane.xlu2 %177  ;;  %v226_v10 = vpop.xlane.xlu0 %225 }
 0x125   :  { %v169_v40 = vpop.xlane.xlu1 %168  ;;  %v305_v47 = vperm.slane %v178_v39, %v984_v62  ;;  %v333_v31 = vperm.slane %v226_v10, %v984_v62 }
 0x126   :  { %v300_v41 = vperm.slane %v169_v40, %v987_v15 }
 0x127   :  { %v306_v34 = vsel %vm289_vm7, %v305_v47, %v304_v38 }
 0x128   :  { %v301_v43 = vsel %vm293_vm8, %v300_v41, %v299_v32 }
 0x129   :  { %v345_v44 = vsel %vm344_vm9, %v301_v43, %v294_v25 }
 0x12c   :  { %v187_v45 = vpop.xlane.xlu2 %186  ;;  %v229_v33 = vpop.xlane.xlu0 %228 }
 0x12d   :  { %v184_v46 = vpop.xlane.xlu1 %183  ;;  %v310_v11 = vperm.slane %v187_v45, %v981_v13  ;;  %v335_v45 = vperm.slane %v229_v33, %v987_v15 }
 0x12e   :  { %v309_v5 = vperm.slane %v184_v46, %v797_v16 }
 0x130   :  { %v311_v19 = vsel %vm285_vm6, %v310_v11, %v309_v5  ;;  %v621_v5 = vperm.slane %v800_v18, 0 }
 0x134   :  { %v190_v48 = vpop.xlane.xlu2 %189 }
 0x135   :  { %v181_v50 = vpop.xlane.xlu1 %180  ;;  %v312_v49 = vperm.slane %v190_v48, %v984_v62 }
 0x136   :  { %v307_v51 = vperm.slane %v181_v50, %v987_v15 }
 0x137   :  { %v313_v24 = vsel %vm289_vm7, %v312_v49, %v311_v19 }
 0x138   :  { %v308_v20 = vsel %vm293_vm8, %v307_v51, %v306_v34  ;;  %v315_v35 = vsel %vm293_vm8, %v314_v27, %v313_v24 }
 0x139   :  { %v347_v53 = vsel %vm346_vm10, %v308_v20, %v345_v44 }
 0x13a   :  { %v349_v46 = vsel %vm348_vm11, %v315_v35, %v347_v53  ;;  %v616_v35 = vrot.slane %v800_v18, 3 }
 0x13c   :  { %v199_v54 = vpop.xlane.xlu2 %198 }
 0x13d   :  { %v196_v55 = vpop.xlane.xlu1 %195  ;;  %v317_v12 = vperm.slane %v199_v54, %v981_v13 }
 0x13e   :  { %v316_v63 = vperm.slane %v196_v55, %v797_v16 }
 0x140   :  { %v318_v30 = vsel %vm285_vm6, %v317_v12, %v316_v63 }
 0x144   :  { %v208_v58 = vpop.xlane.xlu2 %207 }
 0x145   :  { %v202_v59 = vpop.xlane.xlu1 %201  ;;  %v323_v1 = vperm.slane %v208_v58, %v797_v16  ;;  %v1077_v58 = vadd.s32 8, %v1071_v56 }
 0x146   :  { %v319_v21 = vperm.slane %v202_v59, %v984_v62  ;;  %v747_v59 = vld [vmem:[%s1279_s3] ss:$0 sm:$0xff] }
 0x147   :  { %v325_v36 = vsel %vm285_vm6, %v324_v28, %v323_v1  ;;  %716 = vset.pattern.permute.xlu1 %v1077_v58 }
 0x148   :  { %v320_v37 = vsel %vm289_vm7, %v319_v21, %v318_v30 }
 0x14c   :  { %v214_v6 = vpop.xlane.xlu2 %213 }
 0x14d   :  { %v205_v8 = vpop.xlane.xlu1 %204  ;;  %v326_v25 = vperm.slane %v214_v6, %v984_v62  ;;  %v1097_v6 = vadd.s32 24, %v1071_v56 }
 0x14e   :  { %v321_v26 = vperm.slane %v205_v8, %v987_v15 }
 0x14f   :  { %v327_v38 = vsel %vm289_vm7, %v326_v25, %v325_v36 }
 0x150   :  { %v322_v39 = vsel %vm293_vm8, %v321_v26, %v320_v37  ;;  %v624_v37 = vperm.slane %v616_v35, 0 }
 0x151   :  { %v351_v48 = vsel %vm350_vm12, %v322_v39, %v349_v46 }
 0x154   :  { %v217_v9 = vpop.xlane.xlu2 %216 }
 0x155   :  { %v223_v42 = vpop.xlane.xlu1 %222  ;;  %v328_v29 = vperm.slane %v217_v9, %v987_v15 }
 0x156   :  { %v331_v17 = vperm.slane %v223_v42, %v981_v13 }
 0x157   :  { %v329_v40 = vsel %vm293_vm8, %v328_v29, %v327_v38 }
 0x158   :  { %v332_v32 = vsel %vm285_vm6, %v331_v17, %v330_v23  ;;  %v353_v52 = vsel %vm352_vm13, %v329_v40, %v351_v48 }
 0x159   :  { %v334_v41 = vsel %vm289_vm7, %v333_v31, %v332_v32  ;;  %v615_v31 = vrot.slane %v800_v18, 2 }
 0x15a   :  { %v336_v20 = vsel %vm293_vm8, %v335_v45, %v334_v41 }
 0x15b   :  { %v355_v53 = vsel %vm354_vm14, %v336_v20, %v353_v52  ;;  %v623_v30 = vperm.slane %v615_v31, 0  ;;  %v618_v52 = vrot.slane %v800_v18, 5 }
 0x15c   :  { %v235_v0 = vpop.xlane.xlu2 %234 }
 0x15d   :  { %v232_v22 = vpop.xlane.xlu1 %231  ;;  %v338_v43 = vperm.slane %v235_v0, %v981_v13 }
 0x15e   :  { %v337_v44 = vperm.slane %v232_v22, %v797_v16  ;;  %v614_v22 = vrot.slane %v800_v18, 1 }
 0x160   :  { %v339_v54 = vsel %vm285_vm6, %v338_v43, %v337_v44  ;;  %v622_v23 = vperm.slane %v614_v22, 0  ;;  %v617_v44 = vrot.slane %v800_v18, 4 }
 0x162   :  { %v625_v46 = vperm.slane %v617_v44, 0 }
 0x164   :  { %v241_v47 = vpop.xlane.xlu2 %240 }
 0x165   :  { %v342_v50 = vperm.slane %v241_v47, %v987_v15  ;;  %v238_v51 = vpop.xlane.xlu1 %237  ;;  %v382_v15 = vld [vmem:[%s1281_s4] sm:$0xff] }
 0x166   :  { %v340_v34 = vperm.slane %v238_v51, %v984_v62  ;;  %v383_v62 = vld [vmem:[%s1281_s4 + $0x8] sm:$0xff] }
 0x167   :  { %407 = vmatpush.msra.mxu1 %v383_v62 }
 0x168   :  { %v341_v13 = vsel %vm289_vm7, %v340_v34, %v339_v54 }
 0x169   :  { %v343_v16 = vsel %vm293_vm8, %v342_v50, %v341_v13  ;;  %408 = vmatpush.msra.mxu1 %v382_v15  ;;  %v626_v13 = vperm.slane %v618_v52, 0 }
 0x16a   :  { %v357_v55 = vsel %vm356_vm15, %v343_v16, %v355_v53 }
 0x16b   :  { %710 = vmatmul.msk.f32.vlgmr.msra.gmra.mxu0 %vm358_vm0, %v357_v55 }
 0x1e8   :  { %v378_v14 = vpop.f32.mrf.mxu0 }
 0x1e9   :  { %v379_v60 = vadd.f32 %v747_v59, %v378_v14 }
 0x1eb   :  { %381 = vst.msk [vmem:[%s1283_s6] sm:$0xff] %vm358_vm0, %v379_v60  ;;  %711 = vmatmul.msk.f32.vlgmr.msra.gmra.mxu1 %vm358_vm0, %v379_v60 }
 0x268   :  { %v410_v2 = vpop.f32.mrf.mxu1 }
 0x269   :  { %v1093_v3 = vadd.f32 %v748_v61, %v410_v2 }
 0x26b   :  { %v413_v4 = vperm.slane %v1093_v3, 0  ;;  %v438_v7 = vperm.slane %v1093_v3, 1  ;;  %v488_v8 = vperm.slane %v1093_v3, 3  ;;  %v463_v9 = vperm.slane %v1093_v3, 2 }
 0x26c   :  { %v513_v42 = vperm.slane %v1093_v3, 4  ;;  %v538_v10 = vperm.slane %v1093_v3, 5  ;;  %v1120_v11 = vperm.slane %v1093_v3, 6  ;;  %v588_v20 = vperm.slane %v1093_v3, 7 }
 0x26d   :  { %430 = vperm.xlu2 %717, %v413_v4   ;;  %424 = vperm.xlu1 %716, %v413_v4  }
 0x26e   :  { %418 = vperm.xlu0 %715, %v413_v4  }
 0x275   :  { %718 = vset.pattern.permute.xlu2 %v1097_v6  ;;  %719 = vset.pattern.permute.xlu1 %v1071_v56 }
 0x276   :  { %722 = vset.pattern.permute.xlu0 %v1097_v6 }
 0x27d   :  { %436 = vperm.xlu2 %718, %v413_v4   ;;  %443 = vperm.xlu1 %719, %v438_v7  }
 0x27e   :  { %461 = vperm.xlu0 %722, %v438_v7  }
 0x285   :  { %720 = vset.pattern.permute.xlu2 %v1077_v58  ;;  %721 = vset.pattern.permute.xlu1 %v1074_v57 }
 0x286   :  { %727 = vset.pattern.permute.xlu0 %v1071_v56 }
 0x28d   :  { %449 = vperm.xlu2 %720, %v438_v7   ;;  %455 = vperm.xlu1 %721, %v438_v7  }
 0x28e   :  { %493 = vperm.xlu0 %727, %v488_v8  }
 0x295   :  { %723 = vset.pattern.permute.xlu2 %v1071_v56  ;;  %724 = vset.pattern.permute.xlu1 %v1077_v58 }
 0x296   :  { %732 = vset.pattern.permute.xlu0 %v1077_v58 }
 0x29d   :  { %468 = vperm.xlu2 %723, %v463_v9   ;;  %474 = vperm.xlu1 %724, %v463_v9  }
 0x29e   :  { %524 = vperm.xlu0 %732, %v513_v42  }
 0x2a5   :  { %725 = vset.pattern.permute.xlu2 %v1074_v57  ;;  %726 = vset.pattern.permute.xlu1 %v1097_v6 }
 0x2a6   :  { %737 = vset.pattern.permute.xlu0 %v1074_v57 }
 0x2ad   :  { %480 = vperm.xlu2 %725, %v463_v9   ;;  %486 = vperm.xlu1 %726, %v463_v9  }
 0x2ae   :  { %555 = vperm.xlu0 %737, %v538_v10  }
 0x2b5   :  { %728 = vset.pattern.permute.xlu2 %v1077_v58  ;;  %729 = vset.pattern.permute.xlu1 %v1074_v57 }
 0x2b6   :  { %742 = vset.pattern.permute.xlu0 %v1097_v6 }
 0x2bd   :  { %499 = vperm.xlu2 %728, %v488_v8   ;;  %505 = vperm.xlu1 %729, %v488_v8  }
 0x2be   :  { %586 = vperm.xlu0 %742, %v1120_v11  }
 0x2c5   :  { %730 = vset.pattern.permute.xlu2 %v1097_v6  ;;  %731 = vset.pattern.permute.xlu1 %v1071_v56 }
 0x2c7   :  { %v431_v49 = vpop.permute.xlu2 %430 }
 0x2c8   :  { %v639_v12 = vmul.f32 %v621_v5, %v431_v49 }
 0x2ca   :  { %671 = vst.msk [vmem:[%s1284_s7 + $0x10] sm:$0xff] %vm145_vm5, %v639_v12 }
 0x2cd   :  { %511 = vperm.xlu2 %730, %v488_v8   ;;  %518 = vperm.xlu1 %731, %v513_v42  }
 0x2d5   :  { %733 = vset.pattern.permute.xlu2 %v1074_v57  ;;  %734 = vset.pattern.permute.xlu1 %v1097_v6 }
 0x2d7   :  { %v437_v63 = vpop.permute.xlu2 %436 }
 0x2d8   :  { %v640_v17 = vmul.f32 %v621_v5, %v437_v63 }
 0x2da   :  { %672 = vst.msk [vmem:[%s1284_s7 + $0x18] sm:$0xff] %vm145_vm5, %v640_v17 }
 0x2dd   :  { %530 = vperm.xlu2 %733, %v513_v42   ;;  %536 = vperm.xlu1 %734, %v513_v42  }
 0x2df   :  { %v425_v0 = vpop.permute.xlu1 %424 }
 0x2e0   :  { %v638_v19 = vmul.f32 %v621_v5, %v425_v0  ;;  %v419_v1 = vpop.permute.xlu0 %418  ;;  %v620_v0 = vrot.slane %v800_v18, 7 }
 0x2e1   :  { %v637_v21 = vmul.f32 %v621_v5, %v419_v1 }
 0x2e2   :  { %670 = vst.msk [vmem:[%s1284_s7 + $0x8] sm:$0xff] %vm145_vm5, %v638_v19  ;;  %v628_v19 = vperm.slane %v620_v0, 0 }
 0x2e3   :  { %669 = vst.msk [vmem:[%s1284_s7] sm:$0xff] %vm145_vm5, %v637_v21 }
 0x2e5   :  { %735 = vset.pattern.permute.xlu2 %v1071_v56  ;;  %736 = vset.pattern.permute.xlu1 %v1077_v58 }
 0x2e7   :  { %v450_v24 = vpop.permute.xlu2 %449 }
 0x2e8   :  { %v642_v25 = vmul.f32 %v622_v23, %v450_v24 }
 0x2ea   :  { %674 = vst.msk [vmem:[%s1284_s7 + $0x28] sm:$0xff] %vm145_vm5, %v642_v25 }
 0x2ed   :  { %543 = vperm.xlu2 %735, %v538_v10   ;;  %549 = vperm.xlu1 %736, %v538_v10  }
 0x2ef   :  { %v444_v26 = vpop.permute.xlu1 %443 }
 0x2f0   :  { %v641_v27 = vmul.f32 %v622_v23, %v444_v26  ;;  %v462_v28 = vpop.permute.xlu0 %461 }
 0x2f1   :  { %v644_v29 = vmul.f32 %v622_v23, %v462_v28 }
 0x2f2   :  { %673 = vst.msk [vmem:[%s1284_s7 + $0x20] sm:$0xff] %vm145_vm5, %v641_v27 }
 0x2f3   :  { %676 = vst.msk [vmem:[%s1284_s7 + $0x38] sm:$0xff] %vm145_vm5, %v644_v29 }
 0x2f5   :  { %738 = vset.pattern.permute.xlu2 %v1097_v6  ;;  %739 = vset.pattern.permute.xlu1 %v1071_v56 }
 0x2f7   :  { %v469_v32 = vpop.permute.xlu2 %468 }
 0x2f8   :  { %v645_v33 = vmul.f32 %v623_v30, %v469_v32 }
 0x2fa   :  { %677 = vst.msk [vmem:[%s1284_s7 + $0x40] sm:$0xff] %vm145_vm5, %v645_v33 }
 0x2fd   :  { %561 = vperm.xlu2 %738, %v538_v10   ;;  %568 = vperm.xlu1 %739, %v1120_v11  }
 0x2ff   :  { %v456_v36 = vpop.permute.xlu1 %455 }
 0x300   :  { %v643_v38 = vmul.f32 %v622_v23, %v456_v36  ;;  %v494_v39 = vpop.permute.xlu0 %493 }
 0x301   :  { %v649_v40 = vmul.f32 %v624_v37, %v494_v39 }
 0x302   :  { %675 = vst.msk [vmem:[%s1284_s7 + $0x30] sm:$0xff] %vm145_vm5, %v643_v38 }
 0x303   :  { %681 = vst.msk [vmem:[%s1284_s7 + $0x60] sm:$0xff] %vm145_vm5, %v649_v40 }
 0x305   :  { %740 = vset.pattern.permute.xlu2 %v1077_v58  ;;  %741 = vset.pattern.permute.xlu1 %v1074_v57 }
 0x307   :  { %v481_v41 = vpop.permute.xlu2 %480 }
 0x308   :  { %v647_v43 = vmul.f32 %v623_v30, %v481_v41 }
 0x30a   :  { %679 = vst.msk [vmem:[%s1284_s7 + $0x50] sm:$0xff] %vm145_vm5, %v647_v43 }
 0x30d   :  { %574 = vperm.xlu2 %740, %v1120_v11   ;;  %580 = vperm.xlu1 %741, %v1120_v11  }
 0x30f   :  { %v475_v45 = vpop.permute.xlu1 %474 }
 0x310   :  { %v646_v47 = vmul.f32 %v623_v30, %v475_v45  ;;  %v525_v48 = vpop.permute.xlu0 %524 }
 0x311   :  { %v654_v50 = vmul.f32 %v625_v46, %v525_v48 }
 0x312   :  { %678 = vst.msk [vmem:[%s1284_s7 + $0x48] sm:$0xff] %vm145_vm5, %v646_v47 }
 0x313   :  { %686 = vst.msk [vmem:[%s1284_s7 + $0x88] sm:$0xff] %vm145_vm5, %v654_v50 }
 0x315   :  { %743 = vset.pattern.permute.xlu2 %v1071_v56  ;;  %744 = vset.pattern.permute.xlu1 %v1077_v58  ;;  %v619_v56 = vrot.slane %v800_v18, 6 }
 0x317   :  { %v500_v51 = vpop.permute.xlu2 %499  ;;  %v627_v59 = vperm.slane %v619_v56, 0 }
 0x318   :  { %v650_v34 = vmul.f32 %v624_v37, %v500_v51 }
 0x31a   :  { %682 = vst.msk [vmem:[%s1284_s7 + $0x68] sm:$0xff] %vm145_vm5, %v650_v34 }
 0x31d   :  { %593 = vperm.xlu2 %743, %v588_v20   ;;  %599 = vperm.xlu1 %744, %v588_v20  }
 0x31f   :  { %v487_v54 = vpop.permute.xlu1 %486 }
 0x320   :  { %v648_v16 = vmul.f32 %v623_v30, %v487_v54  ;;  %v556_v53 = vpop.permute.xlu0 %555 }
 0x321   :  { %v659_v55 = vmul.f32 %v626_v13, %v556_v53 }
 0x322   :  { %680 = vst.msk [vmem:[%s1284_s7 + $0x58] sm:$0xff] %vm145_vm5, %v648_v16 }
 0x323   :  { %691 = vst.msk [vmem:[%s1284_s7 + $0xb0] sm:$0xff] %vm145_vm5, %v659_v55 }
 0x325   :  { %745 = vset.pattern.permute.xlu2 %v1074_v57  ;;  %746 = vset.pattern.permute.xlu1 %v1097_v6 }
 0x327   :  { %v512_v62 = vpop.permute.xlu2 %511 }
 0x328   :  { %v652_v15 = vmul.f32 %v624_v37, %v512_v62 }
 0x32a   :  { %684 = vst.msk [vmem:[%s1284_s7 + $0x78] sm:$0xff] %vm145_vm5, %v652_v15 }
 0x32d   :  { %605 = vperm.xlu2 %745, %v588_v20   ;;  %611 = vperm.xlu1 %746, %v588_v20  }
 0x32f   :  { %v506_v58 = vpop.permute.xlu1 %505 }
 0x330   :  { %v651_v14 = vmul.f32 %v624_v37, %v506_v58  ;;  %v587_v60 = vpop.permute.xlu0 %586 }
 0x331   :  { %v664_v61 = vmul.f32 %v627_v59, %v587_v60 }
 0x332   :  { %683 = vst.msk [vmem:[%s1284_s7 + $0x70] sm:$0xff] %vm145_vm5, %v651_v14 }
 0x333   :  { %696 = vst.msk [vmem:[%s1284_s7 + $0xd8] sm:$0xff] %vm145_vm5, %v664_v61 }
 0x337   :  { %v531_v57 = vpop.permute.xlu2 %530 }
 0x338   :  { %v655_v2 = vmul.f32 %v625_v46, %v531_v57 }
 0x33a   :  { %687 = vst.msk [vmem:[%s1284_s7 + $0x90] sm:$0xff] %vm145_vm5, %v655_v2 }
 0x33f   :  { %v519_v3 = vpop.permute.xlu1 %518 }
 0x340   :  { %v653_v4 = vmul.f32 %v625_v46, %v519_v3 }
 0x342   :  { %685 = vst.msk [vmem:[%s1284_s7 + $0x80] sm:$0xff] %vm145_vm5, %v653_v4 }
 0x347   :  { %v544_v6 = vpop.permute.xlu2 %543 }
 0x348   :  { %v657_v7 = vmul.f32 %v626_v13, %v544_v6 }
 0x34a   :  { %689 = vst.msk [vmem:[%s1284_s7 + $0xa0] sm:$0xff] %vm145_vm5, %v657_v7 }
 0x34f   :  { %v537_v8 = vpop.permute.xlu1 %536 }
 0x350   :  { %v656_v9 = vmul.f32 %v625_v46, %v537_v8 }
 0x352   :  { %688 = vst.msk [vmem:[%s1284_s7 + $0x98] sm:$0xff] %vm145_vm5, %v656_v9 }
 0x357   :  { %v562_v42 = vpop.permute.xlu2 %561 }
 0x358   :  { %v660_v10 = vmul.f32 %v626_v13, %v562_v42 }
 0x35a   :  { %692 = vst.msk [vmem:[%s1284_s7 + $0xb8] sm:$0xff] %vm145_vm5, %v660_v10 }
 0x35f   :  { %v550_v11 = vpop.permute.xlu1 %549 }
 0x360   :  { %v658_v5 = vmul.f32 %v626_v13, %v550_v11 }
 0x362   :  { %690 = vst.msk [vmem:[%s1284_s7 + $0xa8] sm:$0xff] %vm145_vm5, %v658_v5 }
 0x367   :  { %v575_v49 = vpop.permute.xlu2 %574 }
 0x368   :  { %v662_v12 = vmul.f32 %v627_v59, %v575_v49 }
 0x36a   :  { %694 = vst.msk [vmem:[%s1284_s7 + $0xc8] sm:$0xff] %vm145_vm5, %v662_v12 }
 0x36f   :  { %v569_v63 = vpop.permute.xlu1 %568 }
 0x370   :  { %v661_v17 = vmul.f32 %v627_v59, %v569_v63 }
 0x372   :  { %693 = vst.msk [vmem:[%s1284_s7 + $0xc0] sm:$0xff] %vm145_vm5, %v661_v17 }
 0x377   :  { %v594_v1 = vpop.permute.xlu2 %593 }
 0x378   :  { %v665_v21 = vmul.f32 %v628_v19, %v594_v1 }
 0x37a   :  { %697 = vst.msk [vmem:[%s1284_s7 + $0xe0] sm:$0xff] %vm145_vm5, %v665_v21 }
 0x37f   :  { %v581_v22 = vpop.permute.xlu1 %580 }
 0x380   :  { %v663_v23 = vmul.f32 %v627_v59, %v581_v22 }
 0x382   :  { %695 = vst.msk [vmem:[%s1284_s7 + $0xd0] sm:$0xff] %vm145_vm5, %v663_v23 }
 0x387   :  { %v606_v24 = vpop.permute.xlu2 %605 }
 0x388   :  { %v667_v25 = vmul.f32 %v628_v19, %v606_v24 }
 0x38a   :  { %699 = vst.msk [vmem:[%s1284_s7 + $0xf0] sm:$0xff] %vm145_vm5, %v667_v25 }
 0x38f   :  { %v600_v18 = vpop.permute.xlu1 %599 }
 0x390   :  { %v666_v26 = vmul.f32 %v628_v19, %v600_v18 }
 0x392   :  { %698 = vst.msk [vmem:[%s1284_s7 + $0xe8] sm:$0xff] %vm145_vm5, %v666_v26 }
 0x39f   :  { %v612_v27 = vpop.permute.xlu1 %611 }
 0x3a0   :  { %v668_v28 = vmul.f32 %v628_v19, %v612_v27 }
 0x3a2   :  { %700 = vst.msk [vmem:[%s1284_s7 + $0xf8] sm:$0xff] %vm145_vm5, %v668_v28 }

</bundles_post_ra>
